<compile_context>
chip_gen: v7x
topology: tpu7x:2x2x1
jax: 0.10.0
libtpu: 0.0.40
codegen_flags: <defaults>
</compile_context>

<pallas_src>
import functools

import jax
import jax.numpy as jnp
from jax.experimental import pallas as pl
from jax.experimental.pallas import tpu as pltpu


def transition_kernel(x_ref, w_ref, scale_ref, bias_ref, o_ref):
    # x_ref:     (1, 4, TP, Cin)   bf16 -- 4 = 2x2 pool-window positions
    # w_ref:     (Cin, CoutP)      bf16 -- raw 1x1 conv weight (Cout padded to 128)
    # scale_ref: (1, CoutP)        f32  -- gamma / sqrt(running_var + eps)
    # bias_ref:  (1, CoutP)        f32  -- beta - running_mean * scale
    # o_ref:     (1, TP, CoutP)    f32  -- pooled output tile (P = (H/2)*(W/2))
    tp = o_ref.shape[1]
    coutp = o_ref.shape[2]

    # Hoist the (1,CoutP) -> (TP,CoutP) broadcasts out of the window loop
    # (JAX does not CSE broadcast_in_dim).
    scale = jnp.broadcast_to(scale_ref[...], (tp, coutp))
    bias = jnp.broadcast_to(bias_ref[...], (tp, coutp))

    acc = jnp.zeros((tp, coutp), jnp.float32)
    for k in range(4):                            # static unroll over the 2x2 window
        y = jnp.dot(x_ref[0, k], w_ref[...],       # (TP,Cin)x(Cin,CoutP) on the MXU
                    preferred_element_type=jnp.float32)
        y = y * scale + bias                       # BatchNorm (eval), f32
        acc = acc + y * jax.nn.sigmoid(y)          # SiLU, accumulate pool sum
    o_ref[0] = (acc * 0.25).astype(o_ref.dtype)    # AvgPool2d(2,2)


def _round_up(x, m):
    return ((x + m - 1) // m) * m


def _tile_footprint_bytes(tp, cin, coutp):
    x_bytes = 2 * (4 * tp * cin * 2)                    # double-buffered bf16 input block
    o_bytes = 2 * (tp * coutp * 4)                      # double-buffered f32 output block
    w_bytes = 2 * (cin * coutp * 2 + 2 * coutp * 4)     # weight + scale/bias buffers
    tmp_bytes = 2 * (tp * coutp * 4)                    # in-kernel f32 temporaries (y, acc)
    return x_bytes + o_bytes + w_bytes + tmp_bytes


def _choose_p_tile(p, cin, coutp, n, vmem_budget, min_steps=8):
    # Largest power-of-two tile (multiples of 16 preferred: bf16 sublane tile)
    # that fits the VMEM budget, without shrinking the grid below ~min_steps
    # steps (keeps both v7x TensorCores busy and the pipeline double-buffered).
    cands = [t for t in (1024, 512, 256, 128, 64, 32, 16, 8) if t <= max(8, p)]
    fitting = [t for t in cands
               if _tile_footprint_bytes(t, cin, coutp) <= vmem_budget]
    if not fitting:
        return 8
    for t in fitting:                      # big -> small: first with enough steps
        if n * pl.cdiv(p, t) >= min_steps:
            return t
    return fitting[-1]                     # tiny problem: maximize step count


@functools.partial(jax.jit, static_argnames=("use_input_fusion", "channels_last"))
def transition_layers_pallas(x_nchw, conv_w, gamma, beta, run_mean, run_var,
                             eps=1e-5, *, use_input_fusion=True,
                             channels_last=False):
    """x_nchw: (N, Cin, H, W) float32; conv_w: (Cout, Cin, 1, 1) float32."""
    n, cin, h, w = x_nchw.shape
    cout = conv_w.shape[0]
    assert h % 2 == 0 and w % 2 == 0, "AvgPool2d(2,2) expects even H and W"
    hp, wp = h // 2, w // 2
    p = hp * wp
    coutp = _round_up(cout, 128)            # lane-dense output / full MXU columns

    # ---- VMEM-aware tiling (v5e/v6e: 128 MiB, v7x: 64 MiB physical) ----
    try:
        vmem_cap = int(pltpu.get_tpu_info().vmem_capacity_bytes)
    except Exception:
        vmem_cap = 64 * 1024 * 1024         # conservative (v7x-sized) fallback
    vmem_limit = min(vmem_cap * 3 // 4, 96 * 1024 * 1024)
    tp = _choose_p_tile(p, cin, coutp, n, vmem_budget=vmem_limit // 2)
    p_pad = _round_up(p, tp)

    # ---- glue: ONE fused transpose pass NCHW -> (N, 4, P, Cin) + bf16 cast.
    # With allow_input_fusion this producer can be folded into the kernel's
    # input DMA, removing the materialized HBM intermediate entirely.
    x_win = x_nchw.reshape(n, cin, hp, 2, wp, 2)        # (N, C, h', dh, w', dw)
    x_arr = jnp.transpose(x_win, (0, 3, 5, 2, 4, 1))    # (N, dh, dw, h', w', C)
    x_arr = x_arr.reshape(n, 4, p, cin).astype(jnp.bfloat16)
    if p_pad != p:
        x_arr = jnp.pad(x_arr, ((0, 0), (0, 0), (0, p_pad - p), (0, 0)))

    # ---- glue: BN folded to per-channel scale/bias, applied in f32 in-kernel.
    # The conv weight stays raw bf16 (scale NOT folded into the quantized weight).
    scale = (gamma / jnp.sqrt(run_var + eps)).astype(jnp.float32)
    bias = (beta - run_mean * scale).astype(jnp.float32)
    w2d = conv_w.reshape(cout, cin).T.astype(jnp.bfloat16)      # (Cin, Cout)
    if coutp != cout:
        w2d = jnp.pad(w2d, ((0, 0), (0, coutp - cout)))
        scale = jnp.pad(scale, (0, coutp - cout), constant_values=1.0)
        bias = jnp.pad(bias, (0, coutp - cout))
    scale = scale.reshape(1, coutp)
    bias = bias.reshape(1, coutp)

    grid = (n, p_pad // tp)

    cost = pl.CostEstimate(
        flops=2 * n * 4 * p_pad * cin * coutp,
        transcendentals=n * 4 * p_pad * coutp,
        bytes_accessed=(n * 4 * p_pad * cin * 2 + cin * coutp * 2
                        + 2 * coutp * 4 + n * p_pad * coutp * 4),
    )

    compiler_params = pltpu.CompilerParams(
        dimension_semantics=("parallel", "parallel"),
        vmem_limit_bytes=vmem_limit,
        allow_input_fusion=([True, False, False, False]
                            if use_input_fusion else None),
    )

    out = pl.pallas_call(
        transition_kernel,
        out_shape=jax.ShapeDtypeStruct((n, p_pad, coutp), jnp.float32),
        grid_spec=pltpu.PrefetchScalarGridSpec(
            num_scalar_prefetch=0,
            grid=grid,
            in_specs=[
                pl.BlockSpec((1, 4, tp, cin), lambda i, j: (i, 0, j, 0)),
                pl.BlockSpec((cin, coutp), lambda i, j: (0, 0)),
                pl.BlockSpec((1, coutp), lambda i, j: (0, 0)),
                pl.BlockSpec((1, coutp), lambda i, j: (0, 0)),
            ],
            out_specs=pl.BlockSpec((1, tp, coutp), lambda i, j: (i, j, 0)),
        ),
        compiler_params=compiler_params,
        cost_estimate=cost,
    )(x_arr, w2d, scale, bias)

    # ---- glue: drop padding; back to the module's NCHW contract ----
    out = out[:, :p, :cout].reshape(n, hp, wp, cout)     # (N, H/2, W/2, Cout)
    if channels_last:
        return out
    return jnp.transpose(out, (0, 3, 1, 2))              # (N, Cout, H/2, W/2)


def reference_jax(x_nchw, conv_w, gamma, beta, run_mean, run_var, eps=1e-5):
    """Plain-JAX f32 reference matching the PyTorch module (BN in eval mode)."""
    w2d = conv_w.reshape(conv_w.shape[0], conv_w.shape[1])      # (Cout, Cin)
    y = jnp.einsum('nchw,dc->ndhw', x_nchw, w2d)
    inv = 1.0 / jnp.sqrt(run_var + eps)
    y = (y - run_mean[None, :, None, None]) * inv[None, :, None, None]
    y = y * gamma[None, :, None, None] + beta[None, :, None, None]
    y = y * jax.nn.sigmoid(y)                                   # SiLU
    n, d, h, w = y.shape
    return y.reshape(n, d, h // 2, 2, w // 2, 2).mean(axis=(3, 5))


if __name__ == "__main__":
    key = jax.random.PRNGKey(0)
    N, IN_CH, H, W = 2, 4, 16, 16
    OUT_CH = IN_CH // 2  # module default: out_ch = in_ch // 2

    k_x, k_w, k_g, k_b, k_m, k_v = jax.random.split(key, 6)
    x = jax.random.normal(k_x, (N, IN_CH, H, W), dtype=jnp.float32)
    conv_w = jax.random.normal(k_w, (OUT_CH, IN_CH, 1, 1), dtype=jnp.float32) * 0.1
    gamma = 1.0 + 0.1 * jax.random.normal(k_g, (OUT_CH,), dtype=jnp.float32)
    beta = 0.1 * jax.random.normal(k_b, (OUT_CH,), dtype=jnp.float32)
    run_mean = 0.1 * jax.random.normal(k_m, (OUT_CH,), dtype=jnp.float32)
    run_var = jnp.abs(1.0 + 0.1 * jax.random.normal(k_v, (OUT_CH,), dtype=jnp.float32))

    ref = reference_jax(x, conv_w, gamma, beta, run_mean, run_var)
    expected_shape = (N, OUT_CH, H // 2, W // 2)

    def run(fuse_input):
        return jax.block_until_ready(
            transition_layers_pallas(x, conv_w, gamma, beta, run_mean, run_var,
                                     use_input_fusion=fuse_input))

    # Folding the NCHW->window-major transpose into the kernel's input DMA
    # (allow_input_fusion) is best-effort / toolchain dependent; fall back to
    # the materialized single-pass bf16 rearrangement if it is rejected.
    # The Pallas kernel itself is identical on both paths.
    try:
        out = run(True)
        fused_ok = (out.shape == expected_shape and
                    bool(jnp.allclose(out, ref, atol=3e-2, rtol=3e-2)))
    except Exception:
        fused_ok = False
    if not fused_ok:
        out = run(False)

    assert out.shape == expected_shape, out.shape
    # bf16 MXU inputs with f32 accumulation and f32 BN/SiLU -> loose tolerance
    # vs the f32 reference.
    assert jnp.allclose(out, ref, atol=3e-2, rtol=3e-2), \
        float(jnp.max(jnp.abs(out - ref)))

    print("KERNEL_OK")
</pallas_src>

<mosaic_0001>
module attributes {stable_mosaic.version = 11 : i64} {
  func.func @transition_kernel(%arg0: i32, %arg1: i32, %arg2: memref<1x4x16x4xbf16, #tpu.memory_space<vmem>>, %arg3: memref<4x128xbf16, #tpu.memory_space<vmem>>, %arg4: memref<1x128xf32, #tpu.memory_space<vmem>>, %arg5: memref<1x128xf32, #tpu.memory_space<vmem>>, %arg6: memref<1x16x128xf32, #tpu.memory_space<vmem>>) attributes {dimension_semantics = [#tpu.dimension_semantics<parallel>, #tpu.dimension_semantics<parallel>], iteration_bounds = array<i64: 2, 4>, scalar_prefetch = 0 : i64, scratch_operands = 0 : i64, tpu.core_type = #tpu.core_type<tc>, window_params = [{transform_indices = @transform_0, window_bounds = array<i64: 1, 4, 16, 4>}, {pipeline_mode = #tpu.pipeline_mode<synchronous>, transform_indices = @transform_1, window_bounds = array<i64: 4, 128>}, {pipeline_mode = #tpu.pipeline_mode<synchronous>, transform_indices = @transform_2, window_bounds = array<i64: 1, 128>}, {pipeline_mode = #tpu.pipeline_mode<synchronous>, transform_indices = @transform_3, window_bounds = array<i64: 1, 128>}, {transform_indices = @transform_4, window_bounds = array<i64: 1, 16, 128>}]} {
    %c0 = arith.constant 0 : index
    %c0_0 = arith.constant 0 : index
    %0 = vector.load %arg4[%c0, %c0_0] : memref<1x128xf32, #tpu.memory_space<vmem>>, vector<1x128xf32>
    %1 = vector.shape_cast %0 : vector<1x128xf32> to vector<1x128xf32>
    %2 = vector.broadcast %1 : vector<1x128xf32> to vector<16x128xf32>
    %c0_1 = arith.constant 0 : index
    %c0_2 = arith.constant 0 : index
    %3 = vector.load %arg5[%c0_1, %c0_2] : memref<1x128xf32, #tpu.memory_space<vmem>>, vector<1x128xf32>
    %4 = vector.shape_cast %3 : vector<1x128xf32> to vector<1x128xf32>
    %5 = vector.broadcast %4 : vector<1x128xf32> to vector<16x128xf32>
    %cst = arith.constant 0.000000e+00 : f32
    %6 = vector.broadcast %cst : f32 to vector<16x128xf32>
    %c0_3 = arith.constant 0 : index
    %c0_4 = arith.constant 0 : index
    %c0_5 = arith.constant 0 : index
    %c0_6 = arith.constant 0 : index
    %7 = vector.load %arg2[%c0_3, %c0_4, %c0_5, %c0_6] : memref<1x4x16x4xbf16, #tpu.memory_space<vmem>>, vector<1x1x16x4xbf16>
    %8 = vector.shape_cast %7 : vector<1x1x16x4xbf16> to vector<16x4xbf16>
    %c0_7 = arith.constant 0 : index
    %c0_8 = arith.constant 0 : index
    %9 = vector.load %arg3[%c0_7, %c0_8] : memref<4x128xbf16, #tpu.memory_space<vmem>>, vector<4x128xbf16>
    %cst_9 = arith.constant dense<0.000000e+00> : vector<16x128xf32>
    %10 = tpu.matmul %8, %9, %cst_9 {dimension_numbers = #tpu.dot_dimension_numbers<[1], [0], [0], [1], [0, 0, 1, 1], [], []>} : vector<16x4xbf16>, vector<4x128xbf16>, vector<16x128xf32> -> vector<16x128xf32>
    %11 = arith.mulf %10, %2 : vector<16x128xf32>
    %12 = arith.addf %11, %5 : vector<16x128xf32>
    %13 = arith.negf %12 : vector<16x128xf32>
    %14 = math.exp %13 : vector<16x128xf32>
    %cst_10 = arith.constant 1.000000e+00 : f32
    %15 = vector.broadcast %cst_10 : f32 to vector<16x128xf32>
    %16 = arith.addf %15, %14 : vector<16x128xf32>
    %17 = arith.divf %15, %16 : vector<16x128xf32>
    %18 = arith.mulf %12, %17 : vector<16x128xf32>
    %19 = arith.addf %6, %18 : vector<16x128xf32>
    %c0_11 = arith.constant 0 : index
    %c1 = arith.constant 1 : index
    %c0_12 = arith.constant 0 : index
    %c0_13 = arith.constant 0 : index
    %20 = vector.load %arg2[%c0_11, %c1, %c0_12, %c0_13] : memref<1x4x16x4xbf16, #tpu.memory_space<vmem>>, vector<1x1x16x4xbf16>
    %21 = vector.shape_cast %20 : vector<1x1x16x4xbf16> to vector<16x4xbf16>
    %c0_14 = arith.constant 0 : index
    %c0_15 = arith.constant 0 : index
    %22 = vector.load %arg3[%c0_14, %c0_15] : memref<4x128xbf16, #tpu.memory_space<vmem>>, vector<4x128xbf16>
    %cst_16 = arith.constant dense<0.000000e+00> : vector<16x128xf32>
    %23 = tpu.matmul %21, %22, %cst_16 {dimension_numbers = #tpu.dot_dimension_numbers<[1], [0], [0], [1], [0, 0, 1, 1], [], []>} : vector<16x4xbf16>, vector<4x128xbf16>, vector<16x128xf32> -> vector<16x128xf32>
    %24 = arith.mulf %23, %2 : vector<16x128xf32>
    %25 = arith.addf %24, %5 : vector<16x128xf32>
    %26 = arith.negf %25 : vector<16x128xf32>
    %27 = math.exp %26 : vector<16x128xf32>
    %cst_17 = arith.constant 1.000000e+00 : f32
    %28 = vector.broadcast %cst_17 : f32 to vector<16x128xf32>
    %29 = arith.addf %28, %27 : vector<16x128xf32>
    %30 = arith.divf %28, %29 : vector<16x128xf32>
    %31 = arith.mulf %25, %30 : vector<16x128xf32>
    %32 = arith.addf %19, %31 : vector<16x128xf32>
    %c0_18 = arith.constant 0 : index
    %c2 = arith.constant 2 : index
    %c0_19 = arith.constant 0 : index
    %c0_20 = arith.constant 0 : index
    %33 = vector.load %arg2[%c0_18, %c2, %c0_19, %c0_20] : memref<1x4x16x4xbf16, #tpu.memory_space<vmem>>, vector<1x1x16x4xbf16>
    %34 = vector.shape_cast %33 : vector<1x1x16x4xbf16> to vector<16x4xbf16>
    %c0_21 = arith.constant 0 : index
    %c0_22 = arith.constant 0 : index
    %35 = vector.load %arg3[%c0_21, %c0_22] : memref<4x128xbf16, #tpu.memory_space<vmem>>, vector<4x128xbf16>
    %cst_23 = arith.constant dense<0.000000e+00> : vector<16x128xf32>
    %36 = tpu.matmul %34, %35, %cst_23 {dimension_numbers = #tpu.dot_dimension_numbers<[1], [0], [0], [1], [0, 0, 1, 1], [], []>} : vector<16x4xbf16>, vector<4x128xbf16>, vector<16x128xf32> -> vector<16x128xf32>
    %37 = arith.mulf %36, %2 : vector<16x128xf32>
    %38 = arith.addf %37, %5 : vector<16x128xf32>
    %39 = arith.negf %38 : vector<16x128xf32>
    %40 = math.exp %39 : vector<16x128xf32>
    %cst_24 = arith.constant 1.000000e+00 : f32
    %41 = vector.broadcast %cst_24 : f32 to vector<16x128xf32>
    %42 = arith.addf %41, %40 : vector<16x128xf32>
    %43 = arith.divf %41, %42 : vector<16x128xf32>
    %44 = arith.mulf %38, %43 : vector<16x128xf32>
    %45 = arith.addf %32, %44 : vector<16x128xf32>
    %c0_25 = arith.constant 0 : index
    %c3 = arith.constant 3 : index
    %c0_26 = arith.constant 0 : index
    %c0_27 = arith.constant 0 : index
    %46 = vector.load %arg2[%c0_25, %c3, %c0_26, %c0_27] : memref<1x4x16x4xbf16, #tpu.memory_space<vmem>>, vector<1x1x16x4xbf16>
    %47 = vector.shape_cast %46 : vector<1x1x16x4xbf16> to vector<16x4xbf16>
    %c0_28 = arith.constant 0 : index
    %c0_29 = arith.constant 0 : index
    %48 = vector.load %arg3[%c0_28, %c0_29] : memref<4x128xbf16, #tpu.memory_space<vmem>>, vector<4x128xbf16>
    %cst_30 = arith.constant dense<0.000000e+00> : vector<16x128xf32>
    %49 = tpu.matmul %47, %48, %cst_30 {dimension_numbers = #tpu.dot_dimension_numbers<[1], [0], [0], [1], [0, 0, 1, 1], [], []>} : vector<16x4xbf16>, vector<4x128xbf16>, vector<16x128xf32> -> vector<16x128xf32>
    %50 = arith.mulf %49, %2 : vector<16x128xf32>
    %51 = arith.addf %50, %5 : vector<16x128xf32>
    %52 = arith.negf %51 : vector<16x128xf32>
    %53 = math.exp %52 : vector<16x128xf32>
    %cst_31 = arith.constant 1.000000e+00 : f32
    %54 = vector.broadcast %cst_31 : f32 to vector<16x128xf32>
    %55 = arith.addf %54, %53 : vector<16x128xf32>
    %56 = arith.divf %54, %55 : vector<16x128xf32>
    %57 = arith.mulf %51, %56 : vector<16x128xf32>
    %58 = arith.addf %45, %57 : vector<16x128xf32>
    %cst_32 = arith.constant 2.500000e-01 : f32
    %59 = vector.broadcast %cst_32 : f32 to vector<16x128xf32>
    %60 = arith.mulf %58, %59 : vector<16x128xf32>
    %c0_33 = arith.constant 0 : index
    %c0_34 = arith.constant 0 : index
    %c0_35 = arith.constant 0 : index
    %61 = vector.load %arg6[%c0_33, %c0_34, %c0_35] : memref<1x16x128xf32, #tpu.memory_space<vmem>>, vector<1x16x128xf32>
    %62 = vector.shape_cast %61 : vector<1x16x128xf32> to vector<16x128xf32>
    %63 = vector.shape_cast %60 : vector<16x128xf32> to vector<1x16x128xf32>
    tpu.vector_store %arg6[%c0_33, %c0_34, %c0_35], %63 {strides = array<i32>} : memref<1x16x128xf32, #tpu.memory_space<vmem>>, vector<1x16x128xf32>,
    return
  }
  func.func @transform_0(%arg0: i32, %arg1: i32) -> (i32, i32, i32, i32) {
    %c0_i32 = arith.constant 0 : i32
    %c0_i32_0 = arith.constant 0 : i32
    %c0_i32_1 = arith.constant 0 : i32
    return %arg0, %c0_i32, %arg1, %c0_i32_0 : i32, i32, i32, i32
  }
  func.func @transform_1(%arg0: i32, %arg1: i32) -> (i32, i32) {
    %c0_i32 = arith.constant 0 : i32
    %c0_i32_0 = arith.constant 0 : i32
    %c0_i32_1 = arith.constant 0 : i32
    return %c0_i32, %c0_i32_0 : i32, i32
  }
  func.func @transform_2(%arg0: i32, %arg1: i32) -> (i32, i32) {
    %c0_i32 = arith.constant 0 : i32
    %c0_i32_0 = arith.constant 0 : i32
    %c0_i32_1 = arith.constant 0 : i32
    return %c0_i32, %c0_i32_0 : i32, i32
  }
  func.func @transform_3(%arg0: i32, %arg1: i32) -> (i32, i32) {
    %c0_i32 = arith.constant 0 : i32
    %c0_i32_0 = arith.constant 0 : i32
    %c0_i32_1 = arith.constant 0 : i32
    return %c0_i32, %c0_i32_0 : i32, i32
  }
  func.func @transform_4(%arg0: i32, %arg1: i32) -> (i32, i32, i32) {
    %c0_i32 = arith.constant 0 : i32
    %c0_i32_0 = arith.constant 0 : i32
    return %arg0, %arg1, %c0_i32 : i32, i32, i32
  }
}

module attributes {stable_mosaic.version = 11 : i64} {
  func.func @transition_kernel(%arg0: i32, %arg1: i32, %arg2: memref<1x4x16x4xbf16, #tpu.memory_space<vmem>>, %arg3: memref<4x128xbf16, #tpu.memory_space<vmem>>, %arg4: memref<1x128xf32, #tpu.memory_space<vmem>>, %arg5: memref<1x128xf32, #tpu.memory_space<vmem>>, %arg6: memref<1x16x128xf32, #tpu.memory_space<vmem>>) attributes {dimension_semantics = [#tpu.dimension_semantics<parallel>, #tpu.dimension_semantics<parallel>], iteration_bounds = array<i64: 2, 4>, scalar_prefetch = 0 : i64, scratch_operands = 0 : i64, tpu.core_type = #tpu.core_type<tc>, window_params = [{transform_indices = @transform_0, window_bounds = array<i64: 1, 4, 16, 4>}, {pipeline_mode = #tpu.pipeline_mode<synchronous>, transform_indices = @transform_1, window_bounds = array<i64: 4, 128>}, {pipeline_mode = #tpu.pipeline_mode<synchronous>, transform_indices = @transform_2, window_bounds = array<i64: 1, 128>}, {pipeline_mode = #tpu.pipeline_mode<synchronous>, transform_indices = @transform_3, window_bounds = array<i64: 1, 128>}, {transform_indices = @transform_4, window_bounds = array<i64: 1, 16, 128>}]} {
    %c0 = arith.constant 0 : index
    %c0_0 = arith.constant 0 : index
    %0 = vector.load %arg4[%c0, %c0_0] : memref<1x128xf32, #tpu.memory_space<vmem>>, vector<1x128xf32>
    %1 = vector.shape_cast %0 : vector<1x128xf32> to vector<1x128xf32>
    %2 = vector.broadcast %1 : vector<1x128xf32> to vector<16x128xf32>
    %c0_1 = arith.constant 0 : index
    %c0_2 = arith.constant 0 : index
    %3 = vector.load %arg5[%c0_1, %c0_2] : memref<1x128xf32, #tpu.memory_space<vmem>>, vector<1x128xf32>
    %4 = vector.shape_cast %3 : vector<1x128xf32> to vector<1x128xf32>
    %5 = vector.broadcast %4 : vector<1x128xf32> to vector<16x128xf32>
    %cst = arith.constant 0.000000e+00 : f32
    %6 = vector.broadcast %cst : f32 to vector<16x128xf32>
    %c0_3 = arith.constant 0 : index
    %c0_4 = arith.constant 0 : index
    %c0_5 = arith.constant 0 : index
    %c0_6 = arith.constant 0 : index
    %7 = vector.load %arg2[%c0_3, %c0_4, %c0_5, %c0_6] : memref<1x4x16x4xbf16, #tpu.memory_space<vmem>>, vector<1x1x16x4xbf16>
    %8 = vector.shape_cast %7 : vector<1x1x16x4xbf16> to vector<16x4xbf16>
    %c0_7 = arith.constant 0 : index
    %c0_8 = arith.constant 0 : index
    %9 = vector.load %arg3[%c0_7, %c0_8] : memref<4x128xbf16, #tpu.memory_space<vmem>>, vector<4x128xbf16>
    %cst_9 = arith.constant dense<0.000000e+00> : vector<16x128xf32>
    %10 = tpu.matmul %8, %9, %cst_9 {dimension_numbers = #tpu.dot_dimension_numbers<[1], [0], [0], [1], [0, 0, 1, 1], [], []>} : vector<16x4xbf16>, vector<4x128xbf16>, vector<16x128xf32> -> vector<16x128xf32>
    %11 = arith.mulf %10, %2 : vector<16x128xf32>
    %12 = arith.addf %11, %5 : vector<16x128xf32>
    %13 = arith.negf %12 : vector<16x128xf32>
    %14 = math.exp %13 : vector<16x128xf32>
    %cst_10 = arith.constant 1.000000e+00 : f32
    %15 = vector.broadcast %cst_10 : f32 to vector<16x128xf32>
    %16 = arith.addf %15, %14 : vector<16x128xf32>
    %17 = arith.divf %15, %16 : vector<16x128xf32>
    %18 = arith.mulf %12, %17 : vector<16x128xf32>
    %19 = arith.addf %6, %18 : vector<16x128xf32>
    %c0_11 = arith.constant 0 : index
    %c1 = arith.constant 1 : index
    %c0_12 = arith.constant 0 : index
    %c0_13 = arith.constant 0 : index
    %20 = vector.load %arg2[%c0_11, %c1, %c0_12, %c0_13] : memref<1x4x16x4xbf16, #tpu.memory_space<vmem>>, vector<1x1x16x4xbf16>
    %21 = vector.shape_cast %20 : vector<1x1x16x4xbf16> to vector<16x4xbf16>
    %c0_14 = arith.constant 0 : index
    %c0_15 = arith.constant 0 : index
    %22 = vector.load %arg3[%c0_14, %c0_15] : memref<4x128xbf16, #tpu.memory_space<vmem>>, vector<4x128xbf16>
    %cst_16 = arith.constant dense<0.000000e+00> : vector<16x128xf32>
    %23 = tpu.matmul %21, %22, %cst_16 {dimension_numbers = #tpu.dot_dimension_numbers<[1], [0], [0], [1], [0, 0, 1, 1], [], []>} : vector<16x4xbf16>, vector<4x128xbf16>, vector<16x128xf32> -> vector<16x128xf32>
    %24 = arith.mulf %23, %2 : vector<16x128xf32>
    %25 = arith.addf %24, %5 : vector<16x128xf32>
    %26 = arith.negf %25 : vector<16x128xf32>
    %27 = math.exp %26 : vector<16x128xf32>
    %cst_17 = arith.constant 1.000000e+00 : f32
    %28 = vector.broadcast %cst_17 : f32 to vector<16x128xf32>
    %29 = arith.addf %28, %27 : vector<16x128xf32>
    %30 = arith.divf %28, %29 : vector<16x128xf32>
    %31 = arith.mulf %25, %30 : vector<16x128xf32>
    %32 = arith.addf %19, %31 : vector<16x128xf32>
    %c0_18 = arith.constant 0 : index
    %c2 = arith.constant 2 : index
    %c0_19 = arith.constant 0 : index
    %c0_20 = arith.constant 0 : index
    %33 = vector.load %arg2[%c0_18, %c2, %c0_19, %c0_20] : memref<1x4x16x4xbf16, #tpu.memory_space<vmem>>, vector<1x1x16x4xbf16>
    %34 = vector.shape_cast %33 : vector<1x1x16x4xbf16> to vector<16x4xbf16>
    %c0_21 = arith.constant 0 : index
    %c0_22 = arith.constant 0 : index
    %35 = vector.load %arg3[%c0_21, %c0_22] : memref<4x128xbf16, #tpu.memory_space<vmem>>, vector<4x128xbf16>
    %cst_23 = arith.constant dense<0.000000e+00> : vector<16x128xf32>
    %36 = tpu.matmul %34, %35, %cst_23 {dimension_numbers = #tpu.dot_dimension_numbers<[1], [0], [0], [1], [0, 0, 1, 1], [], []>} : vector<16x4xbf16>, vector<4x128xbf16>, vector<16x128xf32> -> vector<16x128xf32>
    %37 = arith.mulf %36, %2 : vector<16x128xf32>
    %38 = arith.addf %37, %5 : vector<16x128xf32>
    %39 = arith.negf %38 : vector<16x128xf32>
    %40 = math.exp %39 : vector<16x128xf32>
    %cst_24 = arith.constant 1.000000e+00 : f32
    %41 = vector.broadcast %cst_24 : f32 to vector<16x128xf32>
    %42 = arith.addf %41, %40 : vector<16x128xf32>
    %43 = arith.divf %41, %42 : vector<16x128xf32>
    %44 = arith.mulf %38, %43 : vector<16x128xf32>
    %45 = arith.addf %32, %44 : vector<16x128xf32>
    %c0_25 = arith.constant 0 : index
    %c3 = arith.constant 3 : index
    %c0_26 = arith.constant 0 : index
    %c0_27 = arith.constant 0 : index
    %46 = vector.load %arg2[%c0_25, %c3, %c0_26, %c0_27] : memref<1x4x16x4xbf16, #tpu.memory_space<vmem>>, vector<1x1x16x4xbf16>
    %47 = vector.shape_cast %46 : vector<1x1x16x4xbf16> to vector<16x4xbf16>
    %c0_28 = arith.constant 0 : index
    %c0_29 = arith.constant 0 : index
    %48 = vector.load %arg3[%c0_28, %c0_29] : memref<4x128xbf16, #tpu.memory_space<vmem>>, vector<4x128xbf16>
    %cst_30 = arith.constant dense<0.000000e+00> : vector<16x128xf32>
    %49 = tpu.matmul %47, %48, %cst_30 {dimension_numbers = #tpu.dot_dimension_numbers<[1], [0], [0], [1], [0, 0, 1, 1], [], []>} : vector<16x4xbf16>, vector<4x128xbf16>, vector<16x128xf32> -> vector<16x128xf32>
    %50 = arith.mulf %49, %2 : vector<16x128xf32>
    %51 = arith.addf %50, %5 : vector<16x128xf32>
    %52 = arith.negf %51 : vector<16x128xf32>
    %53 = math.exp %52 : vector<16x128xf32>
    %cst_31 = arith.constant 1.000000e+00 : f32
    %54 = vector.broadcast %cst_31 : f32 to vector<16x128xf32>
    %55 = arith.addf %54, %53 : vector<16x128xf32>
    %56 = arith.divf %54, %55 : vector<16x128xf32>
    %57 = arith.mulf %51, %56 : vector<16x128xf32>
    %58 = arith.addf %45, %57 : vector<16x128xf32>
    %cst_32 = arith.constant 2.500000e-01 : f32
    %59 = vector.broadcast %cst_32 : f32 to vector<16x128xf32>
    %60 = arith.mulf %58, %59 : vector<16x128xf32>
    %c0_33 = arith.constant 0 : index
    %c0_34 = arith.constant 0 : index
    %c0_35 = arith.constant 0 : index
    %61 = vector.load %arg6[%c0_33, %c0_34, %c0_35] : memref<1x16x128xf32, #tpu.memory_space<vmem>>, vector<1x16x128xf32>
    %62 = vector.shape_cast %61 : vector<1x16x128xf32> to vector<16x128xf32>
    %63 = vector.shape_cast %60 : vector<16x128xf32> to vector<1x16x128xf32>
    tpu.vector_store %arg6[%c0_33, %c0_34, %c0_35], %63 {strides = array<i32>} : memref<1x16x128xf32, #tpu.memory_space<vmem>>, vector<1x16x128xf32>,
    return
  }
  func.func @transform_0(%arg0: i32, %arg1: i32) -> (i32, i32, i32, i32) {
    %c0_i32 = arith.constant 0 : i32
    %c0_i32_0 = arith.constant 0 : i32
    %c0_i32_1 = arith.constant 0 : i32
    return %arg0, %c0_i32, %arg1, %c0_i32_0 : i32, i32, i32, i32
  }
  func.func @transform_1(%arg0: i32, %arg1: i32) -> (i32, i32) {
    %c0_i32 = arith.constant 0 : i32
    %c0_i32_0 = arith.constant 0 : i32
    %c0_i32_1 = arith.constant 0 : i32
    return %c0_i32, %c0_i32_0 : i32, i32
  }
  func.func @transform_2(%arg0: i32, %arg1: i32) -> (i32, i32) {
    %c0_i32 = arith.constant 0 : i32
    %c0_i32_0 = arith.constant 0 : i32
    %c0_i32_1 = arith.constant 0 : i32
    return %c0_i32, %c0_i32_0 : i32, i32
  }
  func.func @transform_3(%arg0: i32, %arg1: i32) -> (i32, i32) {
    %c0_i32 = arith.constant 0 : i32
    %c0_i32_0 = arith.constant 0 : i32
    %c0_i32_1 = arith.constant 0 : i32
    return %c0_i32, %c0_i32_0 : i32, i32
  }
  func.func @transform_4(%arg0: i32, %arg1: i32) -> (i32, i32, i32) {
    %c0_i32 = arith.constant 0 : i32
    %c0_i32_0 = arith.constant 0 : i32
    return %arg0, %arg1, %c0_i32 : i32, i32, i32
  }
}

</mosaic_0001>

<bundles_post_ra>
// kernel: transition_layers_pallas.1
= control target key start
LH: loop header
LB: loop body
LE: loop exit
PB: predicated region body
PF: predicated region fallthrough
CT: control target
= control target key end

     0   :  { %s949_s15 = smov 0   ;;  %s951_s16 = smov 0   ;;  %s1068_s0 = inlined_call_operand.vmem [shape: bf16[2,4,64,4], index: 0, kind: input, shape index: {}]   ;;  %s1069_s1 = inlined_call_operand.vmem [shape: bf16[4,128], index: 1, kind: input, shape index: {}]   ;;  %s1070_s2 = inlined_call_operand.vmem [shape: f32[1,128], index: 2, kind: input, shape index: {}]   ;;  %s1071_s3 = inlined_call_operand.vmem [shape: f32[1,128], index: 3, kind: input, shape index: {}]   ;;  %s1072_s4 = inlined_call_operand.vmem [shape: f32[2,64,128], index: 4, kind: output, shape index: {}]  }
   0x1   :  { %s953_s17 = smov 0   ;;  %s955_s18 = smov 0  }
   0x2   :  { %s957_s19 = smov 0   ;;  %s959_s20 = smov 0  }
   0x3   :  { %s961_s21 = smov 0  }
   0x4 LB: > { %s23_s22 = sadd.s32 1, %s912_s19  ;;  %s26_s23 = sadd.s32 1, %s916_s20  ;;  %s920_s21 = sphi %s961_s21, %s14_s21   ;;  %s916_s20 = sphi %s959_s20, %s1078_s20   ;;  %s912_s19 = sphi %s957_s19, %s1077_s19   ;;  %s908_s18 = sphi %s955_s18, %s1076_s18   ;;  %s904_s17 = sphi %s953_s17, %s1075_s17   ;;  %s900_s16 = sphi %s951_s16, %s1074_s16   ;;  %s896_s15 = sphi %s949_s15, %s1073_s15  }
   0x5   : > { %p24_p0 = scmp.ge.s32.totalorder %s23_s22, 4  ;;  %p42_p1 = scmp.ne.s32.totalorder %s900_s16, %s896_s15 }
   0x6   : > { %p43_p2 = scmp.eq.s32.totalorder %s920_s21, 0  ;;  %s35_s27 = sadd.s32 1, %s900_s16 }
   0x7   : > { %s1080_s22 = smov (%p24_p0, %s23_s22), 0  ;;  %s1082_s23 = smov (!%p24_p0, %s26_s23), %s916_s20 }
   0x8   : > { %p44_p3 = por %p43_p2, %p42_p1  ;;  %p28_p4 = scmp.ge.s32.totalorder %s1082_s23, 2 }
   0x9   : > { %s31_s24 = ssub.s32 %s912_s19, %s1080_s22  ;;  %p704_p6 = scmp.ge.s32.totalorder %s920_s21, 8 }
   0xa   : > { %s1084_s23 = smov (%p28_p4, %s1082_s23), 0 }
   0xb   : > { %s30_s25 = ssub.s32 %s916_s20, %s1084_s23  ;;  %168 = sbr.rel (%p704_p6) target bundleno = 29 (0x1d), region = 28 }
   0xc   : > { %s32_s26 = sor.u32 %s31_s24, %s30_s25 }
   0xd   : > { %p33_p5 = scmp.eq.s32.totalorder %s32_s26, 0 }
   0xf   : > { %s1000_s28 = scalar_select %p33_p5, %s900_s16, %s35_s27  }
  0x12   : > { %171 = sbr.rel (!%p44_p3) target bundleno = 29 (0x1d), region = 32  ;;  %s173_s29 = sand.u32 (%p44_p3), 1, %s900_s16  }
  0x13   : > { %s706_s30 = sshll.u32 (%p44_p3), %s912_s19, 1  ;;  %s705_s5 = sshll.u32 (%p44_p3), %s173_s29, 5 }
  0x14   : > { %s707_s6 = sshll.u32 (%p44_p3), %s916_s20, 5  ;;  %s175_s12 = scalar_lea.vmem (%p44_p3), [#allocation2], %s705_s5 }
  0x15   : > { %s178_s7 = sadd.s32 (%p44_p3), %s707_s6, %s706_s30 }
  0x16   : > { %s708_s8 = sshll.u32 (%p44_p3), %s178_s7, 2 }
  0x17   : > { %s180_s11 = scalar_lea.vmem (%p44_p3), %s1068_s0, %s708_s8 }
  0x18   : > { %v196_v0 = vld [vmem:[%s180_s11] sm:$0xff] (%p44_p3)  }
  0x19   : > { %v200_v1 = vld [vmem:[%s180_s11 + $0x20] sm:$0xff]   ;;  %197 = vst [vmem:[%s175_s12] sm:$0xff] %v196_v0  }
  0x1a   : > { %v204_v2 = vld [vmem:[%s180_s11 + $0x40] sm:$0xff]   ;;  %201 = vst [vmem:[%s175_s12 + $0x8] sm:$0xff] %v200_v1  }
  0x1b   : > { %205 = vst [vmem:[%s175_s12 + $0x10] sm:$0xff] %v204_v2   ;;  %v208_v3 = vld [vmem:[%s180_s11 + $0x60] sm:$0xff]  }
  0x1c   : > { %209 = vst [vmem:[%s175_s12 + $0x18] sm:$0xff] %v208_v3  }
  0x1d PF: > { %p709_p7 = scmp.ge.s32.totalorder %s920_s21, 1  ;;  %p249_p8 = scmp.lt.s32.totalorder %s920_s21, 9 }
  0x1f   : > { %p250_p9 = pnand %p709_p7, %p249_p8 }
  0x20   : > { %v313_v4 = vld [vmem:[%s1069_s1] sm:$0x3] (!%p250_p9)  ;;  %vm323_vm0 = vcmask (!%p250_p9), 1041408   ;;  %s256_s24 = sand.u32 (!%p250_p9), 1, %s896_s15   ;;  %v922_v5 = vmov (!%p250_p9), 0.0   ;;  %vm319_vm1 = vcmask (!%p250_p9), 31744  }
  0x21   : > { %253 = sbr.rel (%p250_p9) target bundleno = 298 (0x12a), region = 73  ;;  %748 = vmatprep.subr.bf16.mxu0 (!%p250_p9), %v922_v5  ;;  %v325_v6 = vsel (!%p250_p9), %vm323_vm0, %v313_v4, 0  ;;  %754 = vmatprep.subr.bf16.mxu1 (!%p250_p9), %v922_v5  ;;  %s710_s25 = sshll.u32 (!%p250_p9), %s256_s24, 5  ;;  %vm923_vm2 = vmmov (!%p250_p9), 0   ;;  %v714_v11 = vld [vmem:[%s1070_s2] ss:$0 sm:$0xff] (!%p250_p9) }
  0x22   : > { %749 = vmatpush3.bf16.msra.mxu0 (!%p250_p9), %v325_v6  ;;  %755 = vmatpush3.bf16.msra.mxu1 (!%p250_p9), %v325_v6  ;;  %s258_s26 = scalar_lea.vmem (!%p250_p9), [#allocation2], %s710_s25  ;;  %v715_v12 = vld [vmem:[%s1071_s3] ss:$0 sm:$0xff] (!%p250_p9)  ;;  %s711_s5 = sshll.u32 (!%p250_p9), %s904_s17, 1 }
  0x23   : > { %750 = vmatprep.mubr.msk.bf16.mxu0 (!%p250_p9), %vm923_vm2, %v922_v5  ;;  %756 = vmatprep.mubr.msk.bf16.mxu1 (!%p250_p9), %vm923_vm2, %v922_v5  ;;  %v830_v7 = vld [vmem:[%s258_s26] sm:$0xff] (!%p250_p9)   ;;  %v831_v8 = vld [vmem:[%s258_s26 + $0x8] sm:$0xff] (!%p250_p9)   ;;  %v832_v9 = vld [vmem:[%s258_s26 + $0x10] sm:$0xff] (!%p250_p9)   ;;  %p287_p10 = scmp.lt.s32.totalorder (!%p250_p9), %s908_s18, 1  ;;  %p289_p11 = scmp.lt.s32.totalorder (!%p250_p9), %s711_s5, 7 }
  0x24   : > { %760 = vmatprep.subr.bf16.mxu0 (!%p250_p9), %v922_v5  ;;  %766 = vmatprep.subr.bf16.mxu1 (!%p250_p9), %v922_v5  ;;  %v833_v10 = vld [vmem:[%s258_s26 + $0x18] sm:$0xff] (!%p250_p9)  }
  0x25   : > { %751 = vmatmul.mubr.msk.bf16.vlgmr.msra.gmra.mrb[0].mxu0 (!%p250_p9), %vm319_vm1, %v830_v7  ;;  %757 = vmatmul.mubr.msk.bf16.vlgmr.msra.gmra.mrb[0].mxu1 (!%p250_p9), %vm319_vm1, %v831_v8 }
  0x26   : > { %761 = vmatpush3.bf16.msra.mxu0 (!%p250_p9), %v325_v6  ;;  %767 = vmatpush3.bf16.msra.mxu1 (!%p250_p9), %v325_v6 }
  0x27   : > { %762 = vmatprep.mubr.msk.bf16.mxu0 (!%p250_p9), %vm923_vm2, %v922_v5  ;;  %768 = vmatprep.mubr.msk.bf16.mxu1 (!%p250_p9), %vm923_vm2, %v922_v5 }
  0x28   : > { %s1086_s18 = smov (!%p287_p10, %s908_s18), 1  ;;  %s1088_s5 = smov (!%p289_p11, %s711_s5), 7 }
  0x29   : > { %s712_s17 = sshll.u32 %s1086_s18, 3 }
  0x2a   : > { %s292_s6 = sadd.s32 %s712_s17, %s1088_s5 }
  0x2b   : > { %s713_s7 = sshll.u32 %s292_s6, 3 }
  0x2c   : > { %s294_s10 = scalar_lea.vmem %s1072_s4, %s713_s7 }
  0x2d   : > { %763 = vmatmul.mubr.msk.bf16.vlgmr.msra.gmra.mrb[4].mxu0 %vm319_vm1, %v832_v9  ;;  %769 = vmatmul.mubr.msk.bf16.vlgmr.msra.gmra.mrb[4].mxu1 %vm319_vm1, %v833_v10 }
  0xf8   : > { %v361_v13 = vpop.f32.mrb[0].mxu0  ;;  %v433_v15 = vpop.f32.mrb[0].mxu1 }
  0xf9   : > { %v368_v14 = vmul.f32 %v714_v11, %v361_v13  ;;  %v752_v16 = vpop.f32.mrb[1].mxu0  ;;  %v440_v17 = vmul.f32 %v714_v11, %v433_v15  ;;  %v758_v18 = vpop.f32.mrb[1].mxu1 }
  0xfa   : > { %v364_v19 = vpop.f32.mrb[2].mxu0  ;;  %v436_v22 = vpop.f32.mrb[2].mxu1 }
  0xfb   : > { %v1025_v20 = vadd.f32 %v715_v12, %v368_v14  ;;  %v369_v21 = vmul.f32 %v714_v11, %v364_v19  ;;  %v753_v23 = vpop.f32.mrb[3].mxu0  ;;  %v1027_v24 = vadd.f32 %v715_v12, %v440_v17  ;;  %v441_v25 = vmul.f32 %v714_v11, %v436_v22  ;;  %v759_v26 = vpop.f32.mrb[3].mxu1 }
  0xfd   : > { %v718_v27 = vmul.f32 -1.442695, %v1025_v20  ;;  %v1030_v28 = vadd.f32 %v715_v12, %v369_v21  ;;  %v724_v29 = vmul.f32 -1.442695, %v1027_v24  ;;  %v1033_v30 = vadd.f32 %v715_v12, %v441_v25 }
  0xff   : > { %834 = vpow2.f32 %v718_v27  ;;  %v719_v31 = vmul.f32 -1.442695, %v1030_v28  ;;  %v725_v32 = vmul.f32 -1.442695, %v1033_v30 }
 0x100   : > { %836 = vpow2.f32 %v724_v29  ;;  %v505_v33 = vpop.f32.mrb[4].mxu0  ;;  %v577_v35 = vpop.f32.mrb[4].mxu1 }
 0x101   : > { %838 = vpow2.f32 %v719_v31  ;;  %v512_v34 = vmul.f32 %v714_v11, %v505_v33  ;;  %v764_v36 = vpop.f32.mrb[5].mxu0  ;;  %v584_v37 = vmul.f32 %v714_v11, %v577_v35  ;;  %v770_v38 = vpop.f32.mrb[5].mxu1 }
 0x102   : > { %840 = vpow2.f32 %v725_v32  ;;  %v508_v39 = vpop.f32.mrb[6].mxu0  ;;  %v580_v42 = vpop.f32.mrb[6].mxu1 }
 0x103   : > { %v514_v40 = vadd.f32 %v715_v12, %v512_v34  ;;  %v513_v41 = vmul.f32 %v714_v11, %v508_v39  ;;  %v765_v43 = vpop.f32.mrb[7].mxu0  ;;  %v586_v44 = vadd.f32 %v715_v12, %v584_v37  ;;  %v585_v45 = vmul.f32 %v714_v11, %v580_v42  ;;  %v771_v46 = vpop.f32.mrb[7].mxu1 }
 0x105   : > { %v730_v47 = vmul.f32 -1.442695, %v514_v40  ;;  %v515_v48 = vadd.f32 %v715_v12, %v513_v41  ;;  %v736_v49 = vmul.f32 -1.442695, %v586_v44  ;;  %v587_v50 = vadd.f32 %v715_v12, %v585_v45 }
 0x107   : > { %842 = vpow2.f32 %v730_v47  ;;  %v731_v51 = vmul.f32 -1.442695, %v515_v48  ;;  %v737_v52 = vmul.f32 -1.442695, %v587_v50 }
 0x108   : > { %844 = vpow2.f32 %v736_v49 }
 0x109   : > { %v835_v53 = vpop.eup %834  ;;  %846 = vpow2.f32 %v731_v51 }
 0x10a   : > { %v837_v54 = vpop.eup %836  ;;  %v378_v55 = vadd.f32 1.0, %v835_v53  ;;  %848 = vpow2.f32 %v737_v52 }
 0x10b   : > { %v839_v56 = vpop.eup %838  ;;  %v450_v57 = vadd.f32 1.0, %v837_v54 }
 0x10c   : > { %v841_v58 = vpop.eup %840  ;;  %850 = vrcp.f32 %v378_v55  ;;  %v379_v59 = vadd.f32 1.0, %v839_v56 }
 0x10d   : > { %852 = vrcp.f32 %v450_v57  ;;  %v451_v60 = vadd.f32 1.0, %v841_v58 }
 0x10e   : > { %854 = vrcp.f32 %v379_v59 }
 0x10f   : > { %856 = vrcp.f32 %v451_v60 }
 0x111   : > { %v843_v61 = vpop.eup %842 }
 0x112   : > { %v845_v62 = vpop.eup %844  ;;  %v522_v63 = vadd.f32 1.0, %v843_v61 }
 0x113   : > { %v847_v0 = vpop.eup %846  ;;  %v594_v1 = vadd.f32 1.0, %v845_v62 }
 0x114   : > { %v849_v2 = vpop.eup %848  ;;  %858 = vrcp.f32 %v522_v63  ;;  %v523_v3 = vadd.f32 1.0, %v847_v0 }
 0x115   : > { %860 = vrcp.f32 %v594_v1  ;;  %v595_v4 = vadd.f32 1.0, %v849_v2 }
 0x116   : > { %v851_v5 = vpop.eup %850  ;;  %862 = vrcp.f32 %v523_v3 }
 0x117   : > { %v853_v6 = vpop.eup %852  ;;  %v384_v7 = vmul.f32 %v851_v5, %v1025_v20  ;;  %864 = vrcp.f32 %v595_v4 }
 0x118   : > { %v855_v8 = vpop.eup %854  ;;  %v456_v9 = vmul.f32 %v853_v6, %v1027_v24 }
 0x119   : > { %v857_v10 = vpop.eup %856  ;;  %v385_v11 = vmul.f32 %v855_v8, %v1030_v28 }
 0x11a   : > { %v458_v12 = vadd.f32 %v456_v9, %v384_v7  ;;  %v457_v13 = vmul.f32 %v857_v10, %v1033_v30 }
 0x11c   : > { %v459_v14 = vadd.f32 %v457_v13, %v385_v11 }
 0x11e   : > { %v859_v15 = vpop.eup %858 }
 0x11f   : > { %v861_v16 = vpop.eup %860  ;;  %v528_v17 = vmul.f32 %v859_v15, %v514_v40 }
 0x120   : > { %v863_v18 = vpop.eup %862  ;;  %v600_v21 = vmul.f32 %v861_v16, %v586_v44 }
 0x121   : > { %v865_v19 = vpop.eup %864  ;;  %v530_v20 = vadd.f32 %v528_v17, %v458_v12  ;;  %v529_v22 = vmul.f32 %v863_v18, %v515_v48 }
 0x122   : > { %v601_v25 = vmul.f32 %v865_v19, %v587_v50 }
 0x123   : > { %v602_v23 = vadd.f32 %v600_v21, %v530_v20  ;;  %v531_v24 = vadd.f32 %v529_v22, %v459_v14 }
 0x125   : > { %v604_v26 = vmul.f32 0.25, %v602_v23  ;;  %v603_v27 = vadd.f32 %v601_v25, %v531_v24 }
 0x127   : > { %606 = vst [vmem:[%s294_s10] sm:$0xff] %v604_v26  ;;  %v605_v28 = vmul.f32 0.25, %v603_v27 }
 0x129   : > { %607 = vst [vmem:[%s294_s10 + $0x8] sm:$0xff] %v605_v28 }
 0x12a PF: > { %s14_s21 = sadd.s32 1, %s920_s21   ;;  %s1073_s15 = smov %s900_s16 }
 0x12b   : > { %p11_p12 = scmp.ge.s32.totalorder %s14_s21, 10   ;;  %s1074_s16 = smov %s1000_s28 }
 0x12c   : > { %s1075_s17 = smov %s912_s19  ;;  %s1076_s18 = smov %s916_s20 }
 0x12d   : > { %s1077_s19 = smov %s1080_s22  ;;  %s1078_s20 = smov %s1084_s23 }
 0x12e   :  { %13 = sbr.rel (!%p11_p12) target bundleno = 4 (0x4), region = 115 }

// kernel: transition_layers_pallas.1
= control target key start
LH: loop header
LB: loop body
LE: loop exit
PB: predicated region body
PF: predicated region fallthrough
CT: control target
= control target key end

     0   :  { %s949_s15 = smov 0   ;;  %s951_s16 = smov 0   ;;  %s1068_s0 = inlined_call_operand.vmem [shape: bf16[2,4,64,4], index: 0, kind: input, shape index: {}]   ;;  %s1069_s1 = inlined_call_operand.vmem [shape: bf16[4,128], index: 1, kind: input, shape index: {}]   ;;  %s1070_s2 = inlined_call_operand.vmem [shape: f32[1,128], index: 2, kind: input, shape index: {}]   ;;  %s1071_s3 = inlined_call_operand.vmem [shape: f32[1,128], index: 3, kind: input, shape index: {}]   ;;  %s1072_s4 = inlined_call_operand.vmem [shape: f32[2,64,128], index: 4, kind: output, shape index: {}]  }
   0x1   :  { %s953_s17 = smov 0   ;;  %s955_s18 = smov 0  }
   0x2   :  { %s957_s19 = smov 0   ;;  %s959_s20 = smov 0  }
   0x3   :  { %s961_s21 = smov 0  }
   0x4 LB: > { %s23_s22 = sadd.s32 1, %s912_s19  ;;  %s26_s23 = sadd.s32 1, %s916_s20  ;;  %s920_s21 = sphi %s961_s21, %s14_s21   ;;  %s916_s20 = sphi %s959_s20, %s1078_s20   ;;  %s912_s19 = sphi %s957_s19, %s1077_s19   ;;  %s908_s18 = sphi %s955_s18, %s1076_s18   ;;  %s904_s17 = sphi %s953_s17, %s1075_s17   ;;  %s900_s16 = sphi %s951_s16, %s1074_s16   ;;  %s896_s15 = sphi %s949_s15, %s1073_s15  }
   0x5   : > { %p24_p0 = scmp.ge.s32.totalorder %s23_s22, 4  ;;  %p42_p1 = scmp.ne.s32.totalorder %s900_s16, %s896_s15 }
   0x6   : > { %p43_p2 = scmp.eq.s32.totalorder %s920_s21, 0  ;;  %s35_s27 = sadd.s32 1, %s900_s16 }
   0x7   : > { %s1080_s22 = smov (%p24_p0, %s23_s22), 0  ;;  %s1082_s23 = smov (!%p24_p0, %s26_s23), %s916_s20 }
   0x8   : > { %p44_p3 = por %p43_p2, %p42_p1  ;;  %p28_p4 = scmp.ge.s32.totalorder %s1082_s23, 2 }
   0x9   : > { %s31_s24 = ssub.s32 %s912_s19, %s1080_s22  ;;  %p704_p6 = scmp.ge.s32.totalorder %s920_s21, 8 }
   0xa   : > { %s1084_s23 = smov (%p28_p4, %s1082_s23), 0 }
   0xb   : > { %s30_s25 = ssub.s32 %s916_s20, %s1084_s23  ;;  %168 = sbr.rel (%p704_p6) target bundleno = 29 (0x1d), region = 28 }
   0xc   : > { %s32_s26 = sor.u32 %s31_s24, %s30_s25 }
   0xd   : > { %p33_p5 = scmp.eq.s32.totalorder %s32_s26, 0 }
   0xf   : > { %s1000_s28 = scalar_select %p33_p5, %s900_s16, %s35_s27  }
  0x12   : > { %171 = sbr.rel (!%p44_p3) target bundleno = 29 (0x1d), region = 32  ;;  %s173_s29 = sand.u32 (%p44_p3), 1, %s900_s16  }
  0x13   : > { %s706_s30 = sshll.u32 (%p44_p3), %s912_s19, 1  ;;  %s705_s5 = sshll.u32 (%p44_p3), %s173_s29, 5 }
  0x14   : > { %s707_s6 = sshll.u32 (%p44_p3), %s916_s20, 5  ;;  %s175_s12 = scalar_lea.vmem (%p44_p3), [#allocation2], %s705_s5 }
  0x15   : > { %s178_s7 = sadd.s32 (%p44_p3), %s707_s6, %s706_s30 }
  0x16   : > { %s708_s8 = sshll.u32 (%p44_p3), %s178_s7, 2 }
  0x17   : > { %s180_s11 = scalar_lea.vmem (%p44_p3), %s1068_s0, %s708_s8 }
  0x18   : > { %v196_v0 = vld [vmem:[%s180_s11] sm:$0xff] (%p44_p3)  }
  0x19   : > { %v200_v1 = vld [vmem:[%s180_s11 + $0x20] sm:$0xff]   ;;  %197 = vst [vmem:[%s175_s12] sm:$0xff] %v196_v0  }
  0x1a   : > { %v204_v2 = vld [vmem:[%s180_s11 + $0x40] sm:$0xff]   ;;  %201 = vst [vmem:[%s175_s12 + $0x8] sm:$0xff] %v200_v1  }
  0x1b   : > { %205 = vst [vmem:[%s175_s12 + $0x10] sm:$0xff] %v204_v2   ;;  %v208_v3 = vld [vmem:[%s180_s11 + $0x60] sm:$0xff]  }
  0x1c   : > { %209 = vst [vmem:[%s175_s12 + $0x18] sm:$0xff] %v208_v3  }
  0x1d PF: > { %p709_p7 = scmp.ge.s32.totalorder %s920_s21, 1  ;;  %p249_p8 = scmp.lt.s32.totalorder %s920_s21, 9 }
  0x1f   : > { %p250_p9 = pnand %p709_p7, %p249_p8 }
  0x20   : > { %v313_v4 = vld [vmem:[%s1069_s1] sm:$0x3] (!%p250_p9)  ;;  %vm323_vm0 = vcmask (!%p250_p9), 1041408   ;;  %s256_s24 = sand.u32 (!%p250_p9), 1, %s896_s15   ;;  %v922_v5 = vmov (!%p250_p9), 0.0   ;;  %vm319_vm1 = vcmask (!%p250_p9), 31744  }
  0x21   : > { %253 = sbr.rel (%p250_p9) target bundleno = 298 (0x12a), region = 73  ;;  %748 = vmatprep.subr.bf16.mxu0 (!%p250_p9), %v922_v5  ;;  %v325_v6 = vsel (!%p250_p9), %vm323_vm0, %v313_v4, 0  ;;  %754 = vmatprep.subr.bf16.mxu1 (!%p250_p9), %v922_v5  ;;  %s710_s25 = sshll.u32 (!%p250_p9), %s256_s24, 5  ;;  %vm923_vm2 = vmmov (!%p250_p9), 0   ;;  %v714_v11 = vld [vmem:[%s1070_s2] ss:$0 sm:$0xff] (!%p250_p9) }
  0x22   : > { %749 = vmatpush3.bf16.msra.mxu0 (!%p250_p9), %v325_v6  ;;  %755 = vmatpush3.bf16.msra.mxu1 (!%p250_p9), %v325_v6  ;;  %s258_s26 = scalar_lea.vmem (!%p250_p9), [#allocation2], %s710_s25  ;;  %v715_v12 = vld [vmem:[%s1071_s3] ss:$0 sm:$0xff] (!%p250_p9)  ;;  %s711_s5 = sshll.u32 (!%p250_p9), %s904_s17, 1 }
  0x23   : > { %750 = vmatprep.mubr.msk.bf16.mxu0 (!%p250_p9), %vm923_vm2, %v922_v5  ;;  %756 = vmatprep.mubr.msk.bf16.mxu1 (!%p250_p9), %vm923_vm2, %v922_v5  ;;  %v830_v7 = vld [vmem:[%s258_s26] sm:$0xff] (!%p250_p9)   ;;  %v831_v8 = vld [vmem:[%s258_s26 + $0x8] sm:$0xff] (!%p250_p9)   ;;  %v832_v9 = vld [vmem:[%s258_s26 + $0x10] sm:$0xff] (!%p250_p9)   ;;  %p287_p10 = scmp.lt.s32.totalorder (!%p250_p9), %s908_s18, 1  ;;  %p289_p11 = scmp.lt.s32.totalorder (!%p250_p9), %s711_s5, 7 }
  0x24   : > { %760 = vmatprep.subr.bf16.mxu0 (!%p250_p9), %v922_v5  ;;  %766 = vmatprep.subr.bf16.mxu1 (!%p250_p9), %v922_v5  ;;  %v833_v10 = vld [vmem:[%s258_s26 + $0x18] sm:$0xff] (!%p250_p9)  }
  0x25   : > { %751 = vmatmul.mubr.msk.bf16.vlgmr.msra.gmra.mrb[0].mxu0 (!%p250_p9), %vm319_vm1, %v830_v7  ;;  %757 = vmatmul.mubr.msk.bf16.vlgmr.msra.gmra.mrb[0].mxu1 (!%p250_p9), %vm319_vm1, %v831_v8 }
  0x26   : > { %761 = vmatpush3.bf16.msra.mxu0 (!%p250_p9), %v325_v6  ;;  %767 = vmatpush3.bf16.msra.mxu1 (!%p250_p9), %v325_v6 }
  0x27   : > { %762 = vmatprep.mubr.msk.bf16.mxu0 (!%p250_p9), %vm923_vm2, %v922_v5  ;;  %768 = vmatprep.mubr.msk.bf16.mxu1 (!%p250_p9), %vm923_vm2, %v922_v5 }
  0x28   : > { %s1086_s18 = smov (!%p287_p10, %s908_s18), 1  ;;  %s1088_s5 = smov (!%p289_p11, %s711_s5), 7 }
  0x29   : > { %s712_s17 = sshll.u32 %s1086_s18, 3 }
  0x2a   : > { %s292_s6 = sadd.s32 %s712_s17, %s1088_s5 }
  0x2b   : > { %s713_s7 = sshll.u32 %s292_s6, 3 }
  0x2c   : > { %s294_s10 = scalar_lea.vmem %s1072_s4, %s713_s7 }
  0x2d   : > { %763 = vmatmul.mubr.msk.bf16.vlgmr.msra.gmra.mrb[4].mxu0 %vm319_vm1, %v832_v9  ;;  %769 = vmatmul.mubr.msk.bf16.vlgmr.msra.gmra.mrb[4].mxu1 %vm319_vm1, %v833_v10 }
  0xf8   : > { %v361_v13 = vpop.f32.mrb[0].mxu0  ;;  %v433_v15 = vpop.f32.mrb[0].mxu1 }
  0xf9   : > { %v368_v14 = vmul.f32 %v714_v11, %v361_v13  ;;  %v752_v16 = vpop.f32.mrb[1].mxu0  ;;  %v440_v17 = vmul.f32 %v714_v11, %v433_v15  ;;  %v758_v18 = vpop.f32.mrb[1].mxu1 }
  0xfa   : > { %v364_v19 = vpop.f32.mrb[2].mxu0  ;;  %v436_v22 = vpop.f32.mrb[2].mxu1 }
  0xfb   : > { %v1025_v20 = vadd.f32 %v715_v12, %v368_v14  ;;  %v369_v21 = vmul.f32 %v714_v11, %v364_v19  ;;  %v753_v23 = vpop.f32.mrb[3].mxu0  ;;  %v1027_v24 = vadd.f32 %v715_v12, %v440_v17  ;;  %v441_v25 = vmul.f32 %v714_v11, %v436_v22  ;;  %v759_v26 = vpop.f32.mrb[3].mxu1 }
  0xfd   : > { %v718_v27 = vmul.f32 -1.442695, %v1025_v20  ;;  %v1030_v28 = vadd.f32 %v715_v12, %v369_v21  ;;  %v724_v29 = vmul.f32 -1.442695, %v1027_v24  ;;  %v1033_v30 = vadd.f32 %v715_v12, %v441_v25 }
  0xff   : > { %834 = vpow2.f32 %v718_v27  ;;  %v719_v31 = vmul.f32 -1.442695, %v1030_v28  ;;  %v725_v32 = vmul.f32 -1.442695, %v1033_v30 }
 0x100   : > { %836 = vpow2.f32 %v724_v29  ;;  %v505_v33 = vpop.f32.mrb[4].mxu0  ;;  %v577_v35 = vpop.f32.mrb[4].mxu1 }
 0x101   : > { %838 = vpow2.f32 %v719_v31  ;;  %v512_v34 = vmul.f32 %v714_v11, %v505_v33  ;;  %v764_v36 = vpop.f32.mrb[5].mxu0  ;;  %v584_v37 = vmul.f32 %v714_v11, %v577_v35  ;;  %v770_v38 = vpop.f32.mrb[5].mxu1 }
 0x102   : > { %840 = vpow2.f32 %v725_v32  ;;  %v508_v39 = vpop.f32.mrb[6].mxu0  ;;  %v580_v42 = vpop.f32.mrb[6].mxu1 }
 0x103   : > { %v514_v40 = vadd.f32 %v715_v12, %v512_v34  ;;  %v513_v41 = vmul.f32 %v714_v11, %v508_v39  ;;  %v765_v43 = vpop.f32.mrb[7].mxu0  ;;  %v586_v44 = vadd.f32 %v715_v12, %v584_v37  ;;  %v585_v45 = vmul.f32 %v714_v11, %v580_v42  ;;  %v771_v46 = vpop.f32.mrb[7].mxu1 }
 0x105   : > { %v730_v47 = vmul.f32 -1.442695, %v514_v40  ;;  %v515_v48 = vadd.f32 %v715_v12, %v513_v41  ;;  %v736_v49 = vmul.f32 -1.442695, %v586_v44  ;;  %v587_v50 = vadd.f32 %v715_v12, %v585_v45 }
 0x107   : > { %842 = vpow2.f32 %v730_v47  ;;  %v731_v51 = vmul.f32 -1.442695, %v515_v48  ;;  %v737_v52 = vmul.f32 -1.442695, %v587_v50 }
 0x108   : > { %844 = vpow2.f32 %v736_v49 }
 0x109   : > { %v835_v53 = vpop.eup %834  ;;  %846 = vpow2.f32 %v731_v51 }
 0x10a   : > { %v837_v54 = vpop.eup %836  ;;  %v378_v55 = vadd.f32 1.0, %v835_v53  ;;  %848 = vpow2.f32 %v737_v52 }
 0x10b   : > { %v839_v56 = vpop.eup %838  ;;  %v450_v57 = vadd.f32 1.0, %v837_v54 }
 0x10c   : > { %v841_v58 = vpop.eup %840  ;;  %850 = vrcp.f32 %v378_v55  ;;  %v379_v59 = vadd.f32 1.0, %v839_v56 }
 0x10d   : > { %852 = vrcp.f32 %v450_v57  ;;  %v451_v60 = vadd.f32 1.0, %v841_v58 }
 0x10e   : > { %854 = vrcp.f32 %v379_v59 }
 0x10f   : > { %856 = vrcp.f32 %v451_v60 }
 0x111   : > { %v843_v61 = vpop.eup %842 }
 0x112   : > { %v845_v62 = vpop.eup %844  ;;  %v522_v63 = vadd.f32 1.0, %v843_v61 }
 0x113   : > { %v847_v0 = vpop.eup %846  ;;  %v594_v1 = vadd.f32 1.0, %v845_v62 }
 0x114   : > { %v849_v2 = vpop.eup %848  ;;  %858 = vrcp.f32 %v522_v63  ;;  %v523_v3 = vadd.f32 1.0, %v847_v0 }
 0x115   : > { %860 = vrcp.f32 %v594_v1  ;;  %v595_v4 = vadd.f32 1.0, %v849_v2 }
 0x116   : > { %v851_v5 = vpop.eup %850  ;;  %862 = vrcp.f32 %v523_v3 }
 0x117   : > { %v853_v6 = vpop.eup %852  ;;  %v384_v7 = vmul.f32 %v851_v5, %v1025_v20  ;;  %864 = vrcp.f32 %v595_v4 }
 0x118   : > { %v855_v8 = vpop.eup %854  ;;  %v456_v9 = vmul.f32 %v853_v6, %v1027_v24 }
 0x119   : > { %v857_v10 = vpop.eup %856  ;;  %v385_v11 = vmul.f32 %v855_v8, %v1030_v28 }
 0x11a   : > { %v458_v12 = vadd.f32 %v456_v9, %v384_v7  ;;  %v457_v13 = vmul.f32 %v857_v10, %v1033_v30 }
 0x11c   : > { %v459_v14 = vadd.f32 %v457_v13, %v385_v11 }
 0x11e   : > { %v859_v15 = vpop.eup %858 }
 0x11f   : > { %v861_v16 = vpop.eup %860  ;;  %v528_v17 = vmul.f32 %v859_v15, %v514_v40 }
 0x120   : > { %v863_v18 = vpop.eup %862  ;;  %v600_v21 = vmul.f32 %v861_v16, %v586_v44 }
 0x121   : > { %v865_v19 = vpop.eup %864  ;;  %v530_v20 = vadd.f32 %v528_v17, %v458_v12  ;;  %v529_v22 = vmul.f32 %v863_v18, %v515_v48 }
 0x122   : > { %v601_v25 = vmul.f32 %v865_v19, %v587_v50 }
 0x123   : > { %v602_v23 = vadd.f32 %v600_v21, %v530_v20  ;;  %v531_v24 = vadd.f32 %v529_v22, %v459_v14 }
 0x125   : > { %v604_v26 = vmul.f32 0.25, %v602_v23  ;;  %v603_v27 = vadd.f32 %v601_v25, %v531_v24 }
 0x127   : > { %606 = vst [vmem:[%s294_s10] sm:$0xff] %v604_v26  ;;  %v605_v28 = vmul.f32 0.25, %v603_v27 }
 0x129   : > { %607 = vst [vmem:[%s294_s10 + $0x8] sm:$0xff] %v605_v28 }
 0x12a PF: > { %s14_s21 = sadd.s32 1, %s920_s21   ;;  %s1073_s15 = smov %s900_s16 }
 0x12b   : > { %p11_p12 = scmp.ge.s32.totalorder %s14_s21, 10   ;;  %s1074_s16 = smov %s1000_s28 }
 0x12c   : > { %s1075_s17 = smov %s912_s19  ;;  %s1076_s18 = smov %s916_s20 }
 0x12d   : > { %s1077_s19 = smov %s1080_s22  ;;  %s1078_s20 = smov %s1084_s23 }
 0x12e   :  { %13 = sbr.rel (!%p11_p12) target bundleno = 4 (0x4), region = 115 }

</bundles_post_ra>
